<compile_context>
chip_gen: v5e
topology: v5e:2x2
jax: 0.10.0
libtpu: 0.0.40
codegen_flags: <defaults>
</compile_context>

<pallas_src>
import functools

import jax
import jax.numpy as jnp
from jax.experimental import pallas as pl
from jax.experimental.pallas import tpu as pltpu


def _fused_mlp_kernel(*refs, num_layers, negative_slope):
    """Entire MLP in one kernel invocation.

    refs = (x_ref, w0_ref, b0_ref, w1_ref, b1_ref, ..., o_ref)
    Hidden layers: y = leaky_relu(x @ W + b)
    Last layer:    y = softmax(x @ W + b) over the last dim.

    Weights arrive as bf16 (MXU-native); activations are cast to bf16 only for
    the dot, with f32 accumulation and f32 elementwise math throughout.
    """
    x_ref = refs[0]
    o_ref = refs[-1]
    param_refs = refs[1:-1]

    h = x_ref[...].astype(jnp.float32)
    for i in range(num_layers):
        w = param_refs[2 * i][...]        # bf16 [in, out]
        b = param_refs[2 * i + 1][...]    # f32  [1, out]
        h = jnp.dot(h.astype(jnp.bfloat16), w,
                    preferred_element_type=jnp.float32) + b
        if i < num_layers - 1:
            # leaky_relu via a single vmax (valid for 0 < negative_slope < 1).
            h = jnp.maximum(h, negative_slope * h)
        else:
            # Numerically-stable softmax with exact normalization.
            m = jnp.max(h, axis=-1, keepdims=True)
            e = jnp.exp(h - m)
            h = e / jnp.sum(e, axis=-1, keepdims=True)
    o_ref[...] = h.astype(o_ref.dtype)


def fused_linear_model_forward(x, params, negative_slope=0.2, batch_tile=128):
    """Whole LinearModel forward in one pallas_call.

    Small batch: single full-extent VMEM block (latency-bound; adding a grid
    only adds ~600-cycle-per-step overhead).
    Large batch (multiple of `batch_tile`): 1-D "parallel" grid over batch;
    weights/biases use a constant index_map so they stay VMEM-resident across
    grid steps without re-DMA.
    """
    num_layers = len(params)
    flat_params = []
    for w, b in params:
        flat_params.append(w.astype(jnp.bfloat16))   # MXU-native operand dtype
        flat_params.append(b.astype(jnp.float32))    # bias add stays f32

    B, Din = x.shape
    Dout = params[-1][0].shape[1]

    kernel = functools.partial(
        _fused_mlp_kernel,
        num_layers=num_layers,
        negative_slope=negative_slope,
    )
    out_shape = jax.ShapeDtypeStruct((B, Dout), jnp.float32)

    if B >= 2 * batch_tile and B % batch_tile == 0:
        # Scaled-up path: tile batch, shard the parallel axis across cores.
        x_spec = pl.BlockSpec((batch_tile, Din), lambda i: (i, 0))
        param_specs = []
        for w, b in params:
            param_specs.append(pl.BlockSpec(w.shape, lambda i: (0, 0)))
            param_specs.append(pl.BlockSpec(b.shape, lambda i: (0, 0)))
        out_spec = pl.BlockSpec((batch_tile, Dout), lambda i: (i, 0))
        return pl.pallas_call(
            kernel,
            out_shape=out_shape,
            grid=(B // batch_tile,),
            in_specs=[x_spec] + param_specs,
            out_specs=out_spec,
            compiler_params=pltpu.CompilerParams(
                dimension_semantics=("parallel",)),
        )(x, *flat_params)

    # Small-batch / latency-bound path: one full-extent block, no grid.
    vmem_spec = pl.BlockSpec(memory_space=pltpu.MemorySpace.VMEM)
    return pl.pallas_call(
        kernel,
        out_shape=out_shape,
        in_specs=[vmem_spec] * (1 + len(flat_params)),
        out_specs=vmem_spec,
    )(x, *flat_params)


def init_params(key, all_dims):
    """Deterministic init mimicking torch.nn.Linear default (U[-k, k], k=1/sqrt(fan_in)).
    Weights stored already transposed to [in, out]; biases as [1, out]."""
    params = []
    for in_dim, out_dim in zip(all_dims[:-1], all_dims[1:]):
        key, kw, kb = jax.random.split(key, 3)
        bound = 1.0 / jnp.sqrt(in_dim)
        w = jax.random.uniform(
            kw, (in_dim, out_dim), jnp.float32, minval=-bound, maxval=bound
        )
        b = jax.random.uniform(
            kb, (1, out_dim), jnp.float32, minval=-bound, maxval=bound
        )
        params.append((w, b))
    return params


def reference_forward(x, params, negative_slope=0.2, matmul_dtype=jnp.float32):
    """Pure-JAX reference matching LinearModel.forward.

    `matmul_dtype` lets us build a bf16-matmul reference that mirrors the
    kernel's MXU operand dtype for tight correctness checks, plus the plain
    f32 reference for semantic comparison against the PyTorch module.
    """
    h = x.astype(jnp.float32)
    n = len(params)
    for i, (w, b) in enumerate(params):
        h = jnp.dot(h.astype(matmul_dtype), w.astype(matmul_dtype),
                    preferred_element_type=jnp.float32) + b
        if i < n - 1:
            h = jnp.maximum(h, negative_slope * h)
    return jax.nn.softmax(h, axis=-1)


if __name__ == "__main__":
    hyperparameters = {
        "input_dim": 32,
        "output_dim": 8,
        "hidden_dims": [32, 32],
        "negative_slope": 0.2,
    }
    all_dims = [
        hyperparameters["input_dim"],
        *hyperparameters["hidden_dims"],
        hyperparameters["output_dim"],
    ]
    slope = hyperparameters["negative_slope"]

    key = jax.random.PRNGKey(0)
    key, kx, kxl = jax.random.split(key, 3)
    params = init_params(key, all_dims)

    # --- Small-batch (latency-bound, gridless) path: the module's toy shape ---
    batch = 2
    x = jax.random.normal(kx, (batch, hyperparameters["input_dim"]), jnp.float32)
    out = fused_linear_model_forward(x, params, negative_slope=slope)
    out = jax.block_until_ready(out)

    assert out.shape == (batch, hyperparameters["output_dim"])
    # Exact softmax normalization -> row sums are ~1 to f32 precision.
    assert jnp.allclose(jnp.sum(out, axis=-1), 1.0, atol=1e-5)
    # Tight check vs. a reference using the same bf16 matmul operands.
    ref_bf16 = reference_forward(x, params, negative_slope=slope,
                                 matmul_dtype=jnp.bfloat16)
    assert jnp.allclose(out, ref_bf16, atol=5e-5, rtol=5e-5)
    # Semantic check vs. the full-f32 reference (bf16 MXU operands only).
    ref_f32 = reference_forward(x, params, negative_slope=slope)
    assert jnp.allclose(out, ref_f32, atol=2e-2, rtol=2e-2)

    # --- Scaled-up (batch-gridded, "parallel" axis) path ---
    batch_l = 256
    x_l = jax.random.normal(kxl, (batch_l, hyperparameters["input_dim"]),
                            jnp.float32)
    out_l = fused_linear_model_forward(x_l, params, negative_slope=slope)
    out_l = jax.block_until_ready(out_l)

    assert out_l.shape == (batch_l, hyperparameters["output_dim"])
    assert jnp.allclose(jnp.sum(out_l, axis=-1), 1.0, atol=1e-5)
    ref_l_bf16 = reference_forward(x_l, params, negative_slope=slope,
                                   matmul_dtype=jnp.bfloat16)
    assert jnp.allclose(out_l, ref_l_bf16, atol=5e-5, rtol=5e-5)

    print("KERNEL_OK")
</pallas_src>

<mosaic_0001>
module attributes {stable_mosaic.version = 11 : i64} {
  func.func @_fused_mlp_kernel(%arg0: memref<2x32xf32, #tpu.memory_space<vmem>>, %arg1: memref<32x32xbf16, #tpu.memory_space<vmem>>, %arg2: memref<1x32xf32, #tpu.memory_space<vmem>>, %arg3: memref<32x32xbf16, #tpu.memory_space<vmem>>, %arg4: memref<1x32xf32, #tpu.memory_space<vmem>>, %arg5: memref<32x8xbf16, #tpu.memory_space<vmem>>, %arg6: memref<1x8xf32, #tpu.memory_space<vmem>>, %arg7: memref<2x8xf32, #tpu.memory_space<vmem>>) attributes {dimension_semantics = [], scalar_prefetch = 0 : i64, scratch_operands = 0 : i64, tpu.core_type = #tpu.core_type<tc>} {
    %c0 = arith.constant 0 : index
    %c0_0 = arith.constant 0 : index
    %0 = vector.load %arg0[%c0, %c0_0] : memref<2x32xf32, #tpu.memory_space<vmem>>, vector<2x32xf32>
    %c0_1 = arith.constant 0 : index
    %c0_2 = arith.constant 0 : index
    %1 = vector.load %arg1[%c0_1, %c0_2] : memref<32x32xbf16, #tpu.memory_space<vmem>>, vector<32x32xbf16>
    %c0_3 = arith.constant 0 : index
    %c0_4 = arith.constant 0 : index
    %2 = vector.load %arg2[%c0_3, %c0_4] : memref<1x32xf32, #tpu.memory_space<vmem>>, vector<1x32xf32>
    %3 = arith.truncf %0 : vector<2x32xf32> to vector<2x32xbf16>
    %cst = arith.constant dense<0.000000e+00> : vector<2x32xf32>
    %4 = tpu.matmul %3, %1, %cst {dimension_numbers = #tpu.dot_dimension_numbers<[1], [0], [0], [1], [0, 0, 1, 1], [], []>} : vector<2x32xbf16>, vector<32x32xbf16>, vector<2x32xf32> -> vector<2x32xf32>
    %5 = vector.broadcast %2 : vector<1x32xf32> to vector<2x32xf32>
    %6 = arith.addf %4, %5 : vector<2x32xf32>
    %cst_5 = arith.constant 2.000000e-01 : f32
    %7 = vector.broadcast %cst_5 : f32 to vector<2x32xf32>
    %8 = arith.mulf %7, %6 : vector<2x32xf32>
    %9 = arith.maximumf %6, %8 : vector<2x32xf32>
    %c0_6 = arith.constant 0 : index
    %c0_7 = arith.constant 0 : index
    %10 = vector.load %arg3[%c0_6, %c0_7] : memref<32x32xbf16, #tpu.memory_space<vmem>>, vector<32x32xbf16>
    %c0_8 = arith.constant 0 : index
    %c0_9 = arith.constant 0 : index
    %11 = vector.load %arg4[%c0_8, %c0_9] : memref<1x32xf32, #tpu.memory_space<vmem>>, vector<1x32xf32>
    %12 = arith.truncf %9 : vector<2x32xf32> to vector<2x32xbf16>
    %cst_10 = arith.constant dense<0.000000e+00> : vector<2x32xf32>
    %13 = tpu.matmul %12, %10, %cst_10 {dimension_numbers = #tpu.dot_dimension_numbers<[1], [0], [0], [1], [0, 0, 1, 1], [], []>} : vector<2x32xbf16>, vector<32x32xbf16>, vector<2x32xf32> -> vector<2x32xf32>
    %14 = vector.broadcast %11 : vector<1x32xf32> to vector<2x32xf32>
    %15 = arith.addf %13, %14 : vector<2x32xf32>
    %cst_11 = arith.constant 2.000000e-01 : f32
    %16 = vector.broadcast %cst_11 : f32 to vector<2x32xf32>
    %17 = arith.mulf %16, %15 : vector<2x32xf32>
    %18 = arith.maximumf %15, %17 : vector<2x32xf32>
    %c0_12 = arith.constant 0 : index
    %c0_13 = arith.constant 0 : index
    %19 = vector.load %arg5[%c0_12, %c0_13] : memref<32x8xbf16, #tpu.memory_space<vmem>>, vector<32x8xbf16>
    %c0_14 = arith.constant 0 : index
    %c0_15 = arith.constant 0 : index
    %20 = vector.load %arg6[%c0_14, %c0_15] : memref<1x8xf32, #tpu.memory_space<vmem>>, vector<1x8xf32>
    %21 = arith.truncf %18 : vector<2x32xf32> to vector<2x32xbf16>
    %cst_16 = arith.constant dense<0.000000e+00> : vector<2x8xf32>
    %22 = tpu.matmul %21, %19, %cst_16 {dimension_numbers = #tpu.dot_dimension_numbers<[1], [0], [0], [1], [0, 0, 1, 1], [], []>} : vector<2x32xbf16>, vector<32x8xbf16>, vector<2x8xf32> -> vector<2x8xf32>
    %23 = vector.broadcast %20 : vector<1x8xf32> to vector<2x8xf32>
    %24 = arith.addf %22, %23 : vector<2x8xf32>
    %cst_17 = arith.constant dense<0xFF800000> : vector<2xf32>
    %25 = vector.multi_reduction <maximumf>, %24, %cst_17 [1] : vector<2x8xf32> to vector<2xf32>
    %26 = vector.shape_cast %25 : vector<2xf32> to vector<2x1xf32>
    %27 = vector.broadcast %26 : vector<2x1xf32> to vector<2x8xf32>
    %28 = arith.subf %24, %27 : vector<2x8xf32>
    %29 = math.exp %28 : vector<2x8xf32>
    %cst_18 = arith.constant dense<0.000000e+00> : vector<2xf32>
    %30 = vector.multi_reduction <add>, %29, %cst_18 [1] : vector<2x8xf32> to vector<2xf32>
    %31 = vector.shape_cast %30 : vector<2xf32> to vector<2x1xf32>
    %32 = vector.broadcast %31 : vector<2x1xf32> to vector<2x8xf32>
    %33 = arith.divf %29, %32 : vector<2x8xf32>
    %c0_19 = arith.constant 0 : index
    %c0_20 = arith.constant 0 : index
    %34 = vector.load %arg7[%c0_19, %c0_20] : memref<2x8xf32, #tpu.memory_space<vmem>>, vector<2x8xf32>
    tpu.vector_store %arg7[%c0_19, %c0_20], %33 {strides = array<i32>} : memref<2x8xf32, #tpu.memory_space<vmem>>, vector<2x8xf32>,
    return
  }
}

</mosaic_0001>

<bundles_post_ra>
// kernel: tpu_custom_call.1
= control target key start
LH: loop header
LB: loop body
LE: loop exit
PB: predicated region body
PF: predicated region fallthrough
CT: control target
= control target key end

     0   :  { %12 = vsyncpa [#allocation3], 0  ;;  %s380_s0 = inlined_call_operand.vmem [shape: f32[2,32], index: 0, kind: input, shape index: {}]   ;;  %s381_s1 = inlined_call_operand.vmem [shape: bf16[32,32], index: 1, kind: input, shape index: {}]   ;;  %s382_s2 = inlined_call_operand.vmem [shape: f32[1,32], index: 2, kind: input, shape index: {}]   ;;  %s383_s3 = inlined_call_operand.hbm [shape: bf16[32,32], index: 3, kind: input, shape index: {}]   ;;  %s384_s4 = inlined_call_operand.vmem [shape: f32[1,32], index: 4, kind: input, shape index: {}]   ;;  %s385_s5 = inlined_call_operand.vmem [shape: bf16[32,8], index: 5, kind: input, shape index: {}]   ;;  %s386_s6 = inlined_call_operand.vmem [shape: f32[1,8], index: 6, kind: input, shape index: {}]   ;;  %s387_s7 = inlined_call_operand.hbm [shape: f32[2,8], index: 7, kind: output, shape index: {}]  }
   0x1   :  { %13 = vsyncpa [#allocation4], 0  ;;  %s24_s26 = sshll.u32 %s383_s3, 4  ;;  %s300_s27 = smov [#allocation2]   ;;  %s25_s26 = int_to_ptr.hbm [resolvable:$true] %s24_s26 }
   0x2   :  { %s26_s28 = sshll.u32 %s300_s27, 4  ;;  %s301_s29 = smov 64   ;;  %s27_s28 = int_to_ptr.vmem [resolvable:$true] %s26_s28 }
   0x3   :  { %s302_s30 = smov 4  }
   0x4   :  { %32 = dma.hbm_to_vmem [thread:$0]  %s25_s26, 256, %s27_s28, [#allocation3], %s301_s29, %s301_s29, %s302_s30  }
   0x5   :  { %296 = dma.done.wait [#allocation3], 256  }
   0x6   :  { %297 = vsyncadd [#allocation3], 4294967040  ;;  %v232_v0 = vld [vmem:[%s381_s1 + $0x8] sm:$0xff]  ;;  %v231_v1 = vld [vmem:[%s381_s1] sm:$0xff]  ;;  %vm66_vm0 = vcmask 261120   ;;  %vm161_vm1 = vcmask 58368  }
   0x7   :  { %76 = vmatpush.bf16.msra.mxu0 %v232_v0  ;;  %v44_v2 = vld [vmem:[%s380_s0] sm:$0x3]  ;;  %v234_v4 = vld [vmem:[#allocation2 + $0x8] sm:$0xff]  ;;  %s194_s21 = sshll.u32 %s387_s7, 4  ;;  %s195_s21 = int_to_ptr.hbm [resolvable:$true] %s194_s21 }
   0x8   :  { %v50_v3 = vpack.c.bf16 %v44_v2, %v44_v2  ;;  %115 = vmatpush.bf16.msra.mxu1 %v234_v4  ;;  %v233_v5 = vld [vmem:[#allocation2] sm:$0xff]  ;;  %v236_v13 = vld [vmem:[%s385_s5 + $0x8] sm:$0xff] }
   0x9   :  { %v241_v6 = vld [vmem:[%s382_s2] ss:$0 sm:$0xff]  ;;  %154 = vmatpush.bf16.msra.mxu2 %v236_v13 }
   0xa   :  { %v235_v14 = vld [vmem:[%s385_s5] sm:$0xff] }
   0xb   :  { %77 = vmatpush.bf16.msra.mxu0 %v231_v1  ;;  %v242_v15 = vld [vmem:[%s384_s4] ss:$0 sm:$0xff]  ;;  %s303_s4 = smov [#allocation5]  }
   0xc   :  { %116 = vmatpush.bf16.msra.mxu1 %v233_v5  ;;  %v243_v22 = vld [vmem:[%s386_s6] ss:$0 sm:$0xff]  ;;  %s192_s5 = sshll.u32 %s303_s4, 4  ;;  %s193_s5 = int_to_ptr.vmem [resolvable:$true] %s192_s5 }
   0xd   :  { %155 = vmatpush.bf16.msra.mxu2 %v235_v14 }
   0xe   :  { %212 = vmatmul.msk.bf16.vlgmr.msra.gmra.mxu0 %vm66_vm0, %v50_v3 }
  0x8b   :  { %v79_v7 = vpop.f32.mrf.mxu0 }
  0x8c   :  { %v80_v8 = vadd.f32 %v241_v6, %v79_v7 }
  0x8e   :  { %v83_v9 = vmul.f32 0.2, %v80_v8 }
  0x90   :  { %v84_v10 = vmax.f32 %v80_v8, %v83_v9 }
  0x92   :  { %v90_v11 = vpack.c.bf16 %v84_v10, %v84_v10 }
  0x93   :  { %v81_v12 = vpop.f32.mrf.mxu0 }
  0x94   :  { %221 = vmatmul.msk.bf16.vlgmr.msra.gmra.mxu1 %vm66_vm0, %v90_v11 }
 0x111   :  { %v118_v16 = vpop.f32.mrf.mxu1 }
 0x112   :  { %v119_v17 = vadd.f32 %v242_v15, %v118_v16 }
 0x114   :  { %v122_v18 = vmul.f32 0.2, %v119_v17 }
 0x116   :  { %v123_v19 = vmax.f32 %v119_v17, %v122_v18 }
 0x118   :  { %v129_v20 = vpack.c.bf16 %v123_v19, %v123_v19 }
 0x119   :  { %v120_v21 = vpop.f32.mrf.mxu1 }
 0x11a   :  { %230 = vmatmul.msk.bf16.vlgmr.msra.gmra.mxu2 %vm66_vm0, %v129_v20 }
 0x19d   :  { %v157_v23 = vpop.f32.mrf.mxu2 }
 0x19e   :  { %v158_v24 = vadd.f32 %v243_v22, %v157_v23 }
 0x1a0   :  { %v162_v25 = vsel %vm161_vm1, %v158_v24, -inf }
 0x1a1   :  { %163 = vmax.xlane.f32.xlu0 %v162_v25 }
 0x1a5   :  { %v159_v26 = vpop.f32.mrf.mxu2 }
 0x214   :  { %v164_v27 = vpop.xlane.xlu0 %163 }
 0x215   :  { %v165_v28 = vsub.f32 %v158_v24, %v164_v27 }
 0x217   :  { %v166_v29 = vmul.f32 1.442695, %v165_v28 }
 0x219   :  { %244 = vpow2.f32 %v166_v29 }
 0x21f   :  { %v245_v30 = vpop.eup %244 }
 0x220   :  { %v168_v31 = vsel %vm161_vm1, %v245_v30, 0.0 }
 0x221   :  { %169 = vadd.xlane.f32.xlu0 %v168_v31 }
 0x294   :  { %v170_v32 = vpop.xlane.xlu0 %169 }
 0x295   :  { %246 = vrcp.f32 %v170_v32  ;;  %v182_v36 = vand.u32 2147483648, %v170_v32  ;;  %v180_v38 = vand.u32 2147483647, %v170_v32  ;;  %vm176_vm3 = vweird.f32 %v170_v32 }
 0x297   :  { %v183_v40 = vor.u32 1.1754944e-38, %v182_v36  ;;  %vm181_vm5 = vcmp.eq.f32.partialorder %v180_v38, 8.507059e+37 }
 0x29b   :  { %v247_v33 = vpop.eup %246 }
 0x29c   :  { %v172_v34 = vmul.f32 %v247_v33, %v170_v32  ;;  %vm177_vm2 = vweird.f32 %v247_v33 }
 0x29d   :  { %vm178_vm4 = vmor %vm176_vm3, %vm177_vm2 }
 0x29e   :  { %v173_v35 = vsub.f32 1.0, %v172_v34 }
 0x2a0   :  { %v174_v37 = vmul.f32 %v247_v33, %v173_v35 }
 0x2a2   :  { %v175_v39 = vadd.f32 %v247_v33, %v174_v37 }
 0x2a4   :  { %v179_v41 = vsel %vm178_vm4, %v247_v33, %v175_v39 }
 0x2a5   :  { %v184_v42 = vsel %vm181_vm5, %v183_v40, %v179_v41 }
 0x2a6   :  { %v185_v43 = vmul.f32 %v245_v30, %v184_v42 }
 0x2a8   :  { %186 = vst.msk [vmem:[#allocation5] sm:$0x3] %vm161_vm1, %v185_v43 }
 0x2a9   :  { %197 = dma.vmem_to_hbm [thread:$0]  %s193_s5, 32, %s195_s21, [#allocation4]  }
 0x2aa   :  { %298 = dma.done.wait [#allocation4], 32  }
 0x2ab   :  { %299 = vsyncadd [#allocation4], 4294967264 }
 0x2ac   :  { %202 = vsyncpa [#allocation3], 1 }
 0x2ad   :  { %203 = vsyncpa [#allocation4], 1 }

</bundles_post_ra>
